<compile_context>
chip_gen: v7x
topology: tpu7x:2x2x1
jax: 0.10.0
libtpu: 0.0.40
codegen_flags: <defaults>
</compile_context>

<pallas_src>
import functools

import jax
import jax.numpy as jnp
from jax.experimental import pallas as pl
from jax.experimental.pallas import tpu as pltpu

HIDDEN = 32
INPUT = 1
OUTPUT = 1
GATES = 4 * HIDDEN  # 128 == one full lane width


def lstm_lin_kernel(seq_len, batch,
                    x_ref, w_ih_ref, w_hh_ref, b_ref, w_lin_ref, b_lin_ref,
                    out_ref, hs_scr, gxb_scr):
    H = HIDDEN

    # --- Hoisted: input + bias contribution for every timestep, one vector op.
    #     Rows of x_ref are (t, b) pairs in time-major order; input_size == 1,
    #     so x @ W_ih^T is a broadcast multiply against the (1, 4H) weight row.
    gxb_scr[...] = x_ref[...] * w_ih_ref[...] + b_ref[...]      # (seq*B, 4H)

    # --- Hoisted: fused recurrent weight (H, 4H), loaded from VMEM once.
    w_hh = w_hh_ref[...]

    # --- Zero initial state (h0 = c0 = 0 in the PyTorch forward), kept in
    #     vregs across the unrolled recurrence (no per-step state vld/vst).
    h = jnp.zeros((batch, H), jnp.float32)
    c = jnp.zeros((batch, H), jnp.float32)

    # --- Fully static unroll of the recurrence (seq_len is a Python int):
    #     one lane-dense MXU matmul + one EUP sigmoid pass + one tanh per step.
    for t in range(seq_len):
        gxb_t = gxb_scr[pl.ds(t * batch, batch), :]             # (B, 4H)
        gates = jnp.dot(h, w_hh,
                        preferred_element_type=jnp.float32) + gxb_t  # (B, 4H)

        # Sigmoid over the full 128-lane gate vector (i, f, ., o lanes), tanh
        # only on the g lanes; static lane slices pick the gates apart.
        sg = jax.nn.sigmoid(gates)
        i_g = sg[:, 0 * H:1 * H]
        f_g = sg[:, 1 * H:2 * H]
        o_g = sg[:, 3 * H:4 * H]
        g_g = jnp.tanh(gates[:, 2 * H:3 * H])

        c = f_g * c + i_g * g_g
        h = o_g * jnp.tanh(c)
        hs_scr[pl.ds(t * batch, batch), :] = h                  # stash h_t

    # --- Post-loop: single fc matmul (seq*B, H) @ (H, 1) + scalar bias (SMEM),
    #     and a single output store.
    y = jnp.dot(hs_scr[...], w_lin_ref[...],
                preferred_element_type=jnp.float32)             # (seq*B, 1)
    out_ref[...] = (y + b_lin_ref[0]).astype(out_ref.dtype)


def simple_rnn_forward(x, params):
    seq_len, batch, _ = x.shape
    # Wrapper-side layout plumbing: drop the 3-D view; rows are (t, b) pairs.
    x2d = x.reshape(seq_len * batch, INPUT)

    vmem = pl.BlockSpec(memory_space=pltpu.MemorySpace.VMEM)
    smem = pl.BlockSpec(memory_space=pltpu.MemorySpace.SMEM)

    kernel = functools.partial(lstm_lin_kernel, seq_len, batch)

    out = pl.pallas_call(
        kernel,
        out_shape=jax.ShapeDtypeStruct((seq_len * batch, OUTPUT), jnp.float32),
        in_specs=[vmem,   # x            (seq*B, 1)
                  vmem,   # W_ih row     (1, 4H)
                  vmem,   # W_hh fused   (H, 4H)
                  vmem,   # b_ih + b_hh  (1, 4H)
                  vmem,   # W_lin^T      (H, 1)
                  smem],  # b_lin        (1,)  scalar in SMEM
        out_specs=vmem,
        scratch_shapes=[
            pltpu.VMEM((seq_len * batch, HIDDEN), jnp.float32),   # hs (all h_t)
            pltpu.VMEM((seq_len * batch, GATES), jnp.float32),    # gxb precompute
        ],
    )(x2d, params["w_ih_row"], params["w_hh_fused"], params["b_fused"],
      params["w_lin_t"], params["b_lin_smem"])

    return out.reshape(seq_len, batch, OUTPUT)


def init_params(key):
    """Deterministic parameter init matching PyTorch LSTM/Linear shapes."""
    k = 1.0 / jnp.sqrt(jnp.float32(HIDDEN))
    keys = jax.random.split(key, 6)
    w_ih = jax.random.uniform(keys[0], (4 * HIDDEN, INPUT), jnp.float32, -k, k)
    w_hh = jax.random.uniform(keys[1], (4 * HIDDEN, HIDDEN), jnp.float32, -k, k)
    b_ih = jax.random.uniform(keys[2], (4 * HIDDEN,), jnp.float32, -k, k)
    b_hh = jax.random.uniform(keys[3], (4 * HIDDEN,), jnp.float32, -k, k)
    w_lin = jax.random.uniform(keys[4], (OUTPUT, HIDDEN), jnp.float32, -k, k)
    b_lin = jax.random.uniform(keys[5], (OUTPUT,), jnp.float32, -k, k)

    params = {
        # Kernel-side fused layouts: gates concatenated along the lane axis in
        # PyTorch order (i, f, g, o).
        "w_ih_row": w_ih.reshape(1, GATES),          # (4H, 1) -> (1, 4H)
        "w_hh_fused": w_hh.T,                        # (4H, H) -> (H, 4H), so h @ W = gates
        "b_fused": (b_ih + b_hh).reshape(1, GATES),  # (1, 4H)
        "w_lin_t": w_lin.T,                          # (H, 1)
        "b_lin_smem": b_lin,                         # (1,) scalar for SMEM
        # Raw PyTorch-layout params kept for the pure-JAX reference.
        "w_ih": w_ih, "w_hh": w_hh, "b_ih": b_ih, "b_hh": b_hh,
        "w_lin": w_lin, "b_lin_raw": b_lin,
    }
    return params


def ref_forward(x, p):
    """Pure-JAX reference of the PyTorch forward (lax.scan over time)."""
    seq, batch, _ = x.shape
    h0 = jnp.zeros((batch, HIDDEN), jnp.float32)
    c0 = jnp.zeros((batch, HIDDEN), jnp.float32)

    def step(carry, x_t):
        h, c = carry
        gates = (x_t @ p["w_ih"].T + p["b_ih"] + h @ p["w_hh"].T + p["b_hh"])
        i_g, f_g, g_g, o_g = jnp.split(gates, 4, axis=-1)
        i_g = jax.nn.sigmoid(i_g)
        f_g = jax.nn.sigmoid(f_g)
        g_g = jnp.tanh(g_g)
        o_g = jax.nn.sigmoid(o_g)
        c_new = f_g * c + i_g * g_g
        h_new = o_g * jnp.tanh(c_new)
        return (h_new, c_new), h_new

    _, hs = jax.lax.scan(step, (h0, c0), x)          # (seq, batch, H)
    return hs @ p["w_lin"].T + p["b_lin_raw"]        # (seq, batch, 1)


if __name__ == "__main__":
    key = jax.random.PRNGKey(0)
    pkey, xkey = jax.random.split(key)
    params = init_params(pkey)

    seq_len, batch = 8, 2
    x = jax.random.normal(xkey, (seq_len, batch, INPUT), jnp.float32)

    out = simple_rnn_forward(x, params)
    out = jax.block_until_ready(out)

    expected = ref_forward(x, params)
    assert out.shape == (seq_len, batch, OUTPUT)
    assert jnp.allclose(out, expected, atol=1e-5, rtol=1e-5)

    print("KERNEL_OK")
</pallas_src>

<mosaic_0001>
module attributes {stable_mosaic.version = 11 : i64} {
  func.func @lstm_lin_kernel(%arg0: memref<16x1xf32, #tpu.memory_space<vmem>>, %arg1: memref<1x128xf32, #tpu.memory_space<vmem>>, %arg2: memref<32x128xf32, #tpu.memory_space<vmem>>, %arg3: memref<1x128xf32, #tpu.memory_space<vmem>>, %arg4: memref<32x1xf32, #tpu.memory_space<vmem>>, %arg5: memref<1xf32, #tpu.memory_space<smem>>, %arg6: memref<16x1xf32, #tpu.memory_space<vmem>>, %arg7: memref<16x32xf32, #tpu.memory_space<vmem>>, %arg8: memref<16x128xf32, #tpu.memory_space<vmem>>) attributes {dimension_semantics = [], scalar_prefetch = 0 : i64, scratch_operands = 2 : i64, tpu.core_type = #tpu.core_type<tc>} {
    %c0 = arith.constant 0 : index
    %c0_0 = arith.constant 0 : index
    %0 = vector.load %arg0[%c0, %c0_0] : memref<16x1xf32, #tpu.memory_space<vmem>>, vector<16x1xf32>
    %c0_1 = arith.constant 0 : index
    %c0_2 = arith.constant 0 : index
    %1 = vector.load %arg1[%c0_1, %c0_2] : memref<1x128xf32, #tpu.memory_space<vmem>>, vector<1x128xf32>
    %2 = vector.broadcast %0 : vector<16x1xf32> to vector<16x128xf32>
    %3 = vector.broadcast %1 : vector<1x128xf32> to vector<16x128xf32>
    %4 = arith.mulf %2, %3 : vector<16x128xf32>
    %c0_3 = arith.constant 0 : index
    %c0_4 = arith.constant 0 : index
    %5 = vector.load %arg3[%c0_3, %c0_4] : memref<1x128xf32, #tpu.memory_space<vmem>>, vector<1x128xf32>
    %6 = vector.broadcast %5 : vector<1x128xf32> to vector<16x128xf32>
    %7 = arith.addf %4, %6 : vector<16x128xf32>
    %c0_5 = arith.constant 0 : index
    %c0_6 = arith.constant 0 : index
    %8 = vector.load %arg8[%c0_5, %c0_6] : memref<16x128xf32, #tpu.memory_space<vmem>>, vector<16x128xf32>
    tpu.vector_store %arg8[%c0_5, %c0_6], %7 {strides = array<i32>} : memref<16x128xf32, #tpu.memory_space<vmem>>, vector<16x128xf32>,
    %c0_7 = arith.constant 0 : index
    %c0_8 = arith.constant 0 : index
    %9 = vector.load %arg2[%c0_7, %c0_8] : memref<32x128xf32, #tpu.memory_space<vmem>>, vector<32x128xf32>
    %cst = arith.constant 0.000000e+00 : f32
    %10 = vector.broadcast %cst : f32 to vector<2x32xf32>
    %cst_9 = arith.constant 0.000000e+00 : f32
    %11 = vector.broadcast %cst_9 : f32 to vector<2x32xf32>
    %c0_10 = arith.constant 0 : index
    %c0_11 = arith.constant 0 : index
    %12 = vector.load %arg8[%c0_10, %c0_11] : memref<16x128xf32, #tpu.memory_space<vmem>>, vector<2x128xf32>
    %cst_12 = arith.constant dense<0.000000e+00> : vector<2x128xf32>
    %13 = tpu.matmul %10, %9, %cst_12 {dimension_numbers = #tpu.dot_dimension_numbers<[1], [0], [0], [1], [0, 0, 1, 1], [], []>} : vector<2x32xf32>, vector<32x128xf32>, vector<2x128xf32> -> vector<2x128xf32>
    %14 = arith.addf %13, %12 : vector<2x128xf32>
    %15 = arith.negf %14 : vector<2x128xf32>
    %16 = math.exp %15 : vector<2x128xf32>
    %cst_13 = arith.constant 1.000000e+00 : f32
    %17 = vector.broadcast %cst_13 : f32 to vector<2x128xf32>
    %18 = arith.addf %17, %16 : vector<2x128xf32>
    %19 = arith.divf %17, %18 : vector<2x128xf32>
    %20 = vector.extract_strided_slice %19 {offsets = [0, 0], sizes = [2, 32], strides = [1, 1]} : vector<2x128xf32> to vector<2x32xf32>
    %21 = vector.extract_strided_slice %19 {offsets = [0, 32], sizes = [2, 32], strides = [1, 1]} : vector<2x128xf32> to vector<2x32xf32>
    %22 = vector.extract_strided_slice %19 {offsets = [0, 96], sizes = [2, 32], strides = [1, 1]} : vector<2x128xf32> to vector<2x32xf32>
    %23 = vector.extract_strided_slice %14 {offsets = [0, 64], sizes = [2, 32], strides = [1, 1]} : vector<2x128xf32> to vector<2x32xf32>
    %24 = math.tanh %23 : vector<2x32xf32>
    %25 = arith.mulf %21, %11 : vector<2x32xf32>
    %26 = arith.mulf %20, %24 : vector<2x32xf32>
    %27 = arith.addf %25, %26 : vector<2x32xf32>
    %28 = math.tanh %27 : vector<2x32xf32>
    %29 = arith.mulf %22, %28 : vector<2x32xf32>
    %c0_14 = arith.constant 0 : index
    %c0_15 = arith.constant 0 : index
    %30 = vector.load %arg7[%c0_14, %c0_15] : memref<16x32xf32, #tpu.memory_space<vmem>>, vector<2x32xf32>
    tpu.vector_store %arg7[%c0_14, %c0_15], %29 {strides = array<i32>} : memref<16x32xf32, #tpu.memory_space<vmem>>, vector<2x32xf32>,
    %c2 = arith.constant 2 : index
    %c0_16 = arith.constant 0 : index
    %31 = vector.load %arg8[%c2, %c0_16] : memref<16x128xf32, #tpu.memory_space<vmem>>, vector<2x128xf32>
    %cst_17 = arith.constant dense<0.000000e+00> : vector<2x128xf32>
    %32 = tpu.matmul %29, %9, %cst_17 {dimension_numbers = #tpu.dot_dimension_numbers<[1], [0], [0], [1], [0, 0, 1, 1], [], []>} : vector<2x32xf32>, vector<32x128xf32>, vector<2x128xf32> -> vector<2x128xf32>
    %33 = arith.addf %32, %31 : vector<2x128xf32>
    %34 = arith.negf %33 : vector<2x128xf32>
    %35 = math.exp %34 : vector<2x128xf32>
    %cst_18 = arith.constant 1.000000e+00 : f32
    %36 = vector.broadcast %cst_18 : f32 to vector<2x128xf32>
    %37 = arith.addf %36, %35 : vector<2x128xf32>
    %38 = arith.divf %36, %37 : vector<2x128xf32>
    %39 = vector.extract_strided_slice %38 {offsets = [0, 0], sizes = [2, 32], strides = [1, 1]} : vector<2x128xf32> to vector<2x32xf32>
    %40 = vector.extract_strided_slice %38 {offsets = [0, 32], sizes = [2, 32], strides = [1, 1]} : vector<2x128xf32> to vector<2x32xf32>
    %41 = vector.extract_strided_slice %38 {offsets = [0, 96], sizes = [2, 32], strides = [1, 1]} : vector<2x128xf32> to vector<2x32xf32>
    %42 = vector.extract_strided_slice %33 {offsets = [0, 64], sizes = [2, 32], strides = [1, 1]} : vector<2x128xf32> to vector<2x32xf32>
    %43 = math.tanh %42 : vector<2x32xf32>
    %44 = arith.mulf %40, %27 : vector<2x32xf32>
    %45 = arith.mulf %39, %43 : vector<2x32xf32>
    %46 = arith.addf %44, %45 : vector<2x32xf32>
    %47 = math.tanh %46 : vector<2x32xf32>
    %48 = arith.mulf %41, %47 : vector<2x32xf32>
    %c2_19 = arith.constant 2 : index
    %c0_20 = arith.constant 0 : index
    %49 = vector.load %arg7[%c2_19, %c0_20] : memref<16x32xf32, #tpu.memory_space<vmem>>, vector<2x32xf32>
    tpu.vector_store %arg7[%c2_19, %c0_20], %48 {strides = array<i32>} : memref<16x32xf32, #tpu.memory_space<vmem>>, vector<2x32xf32>,
    %c4 = arith.constant 4 : index
    %c0_21 = arith.constant 0 : index
    %50 = vector.load %arg8[%c4, %c0_21] : memref<16x128xf32, #tpu.memory_space<vmem>>, vector<2x128xf32>
    %cst_22 = arith.constant dense<0.000000e+00> : vector<2x128xf32>
    %51 = tpu.matmul %48, %9, %cst_22 {dimension_numbers = #tpu.dot_dimension_numbers<[1], [0], [0], [1], [0, 0, 1, 1], [], []>} : vector<2x32xf32>, vector<32x128xf32>, vector<2x128xf32> -> vector<2x128xf32>
    %52 = arith.addf %51, %50 : vector<2x128xf32>
    %53 = arith.negf %52 : vector<2x128xf32>
    %54 = math.exp %53 : vector<2x128xf32>
    %cst_23 = arith.constant 1.000000e+00 : f32
    %55 = vector.broadcast %cst_23 : f32 to vector<2x128xf32>
    %56 = arith.addf %55, %54 : vector<2x128xf32>
    %57 = arith.divf %55, %56 : vector<2x128xf32>
    %58 = vector.extract_strided_slice %57 {offsets = [0, 0], sizes = [2, 32], strides = [1, 1]} : vector<2x128xf32> to vector<2x32xf32>
    %59 = vector.extract_strided_slice %57 {offsets = [0, 32], sizes = [2, 32], strides = [1, 1]} : vector<2x128xf32> to vector<2x32xf32>
    %60 = vector.extract_strided_slice %57 {offsets = [0, 96], sizes = [2, 32], strides = [1, 1]} : vector<2x128xf32> to vector<2x32xf32>
    %61 = vector.extract_strided_slice %52 {offsets = [0, 64], sizes = [2, 32], strides = [1, 1]} : vector<2x128xf32> to vector<2x32xf32>
    %62 = math.tanh %61 : vector<2x32xf32>
    %63 = arith.mulf %59, %46 : vector<2x32xf32>
    %64 = arith.mulf %58, %62 : vector<2x32xf32>
    %65 = arith.addf %63, %64 : vector<2x32xf32>
    %66 = math.tanh %65 : vector<2x32xf32>
    %67 = arith.mulf %60, %66 : vector<2x32xf32>
    %c4_24 = arith.constant 4 : index
    %c0_25 = arith.constant 0 : index
    %68 = vector.load %arg7[%c4_24, %c0_25] : memref<16x32xf32, #tpu.memory_space<vmem>>, vector<2x32xf32>
    tpu.vector_store %arg7[%c4_24, %c0_25], %67 {strides = array<i32>} : memref<16x32xf32, #tpu.memory_space<vmem>>, vector<2x32xf32>,
    %c6 = arith.constant 6 : index
    %c0_26 = arith.constant 0 : index
    %69 = vector.load %arg8[%c6, %c0_26] : memref<16x128xf32, #tpu.memory_space<vmem>>, vector<2x128xf32>
    %cst_27 = arith.constant dense<0.000000e+00> : vector<2x128xf32>
    %70 = tpu.matmul %67, %9, %cst_27 {dimension_numbers = #tpu.dot_dimension_numbers<[1], [0], [0], [1], [0, 0, 1, 1], [], []>} : vector<2x32xf32>, vector<32x128xf32>, vector<2x128xf32> -> vector<2x128xf32>
    %71 = arith.addf %70, %69 : vector<2x128xf32>
    %72 = arith.negf %71 : vector<2x128xf32>
    %73 = math.exp %72 : vector<2x128xf32>
    %cst_28 = arith.constant 1.000000e+00 : f32
    %74 = vector.broadcast %cst_28 : f32 to vector<2x128xf32>
    %75 = arith.addf %74, %73 : vector<2x128xf32>
    %76 = arith.divf %74, %75 : vector<2x128xf32>
    %77 = vector.extract_strided_slice %76 {offsets = [0, 0], sizes = [2, 32], strides = [1, 1]} : vector<2x128xf32> to vector<2x32xf32>
    %78 = vector.extract_strided_slice %76 {offsets = [0, 32], sizes = [2, 32], strides = [1, 1]} : vector<2x128xf32> to vector<2x32xf32>
    %79 = vector.extract_strided_slice %76 {offsets = [0, 96], sizes = [2, 32], strides = [1, 1]} : vector<2x128xf32> to vector<2x32xf32>
    %80 = vector.extract_strided_slice %71 {offsets = [0, 64], sizes = [2, 32], strides = [1, 1]} : vector<2x128xf32> to vector<2x32xf32>
    %81 = math.tanh %80 : vector<2x32xf32>
    %82 = arith.mulf %78, %65 : vector<2x32xf32>
    %83 = arith.mulf %77, %81 : vector<2x32xf32>
    %84 = arith.addf %82, %83 : vector<2x32xf32>
    %85 = math.tanh %84 : vector<2x32xf32>
    %86 = arith.mulf %79, %85 : vector<2x32xf32>
    %c6_29 = arith.constant 6 : index
    %c0_30 = arith.constant 0 : index
    %87 = vector.load %arg7[%c6_29, %c0_30] : memref<16x32xf32, #tpu.memory_space<vmem>>, vector<2x32xf32>
    tpu.vector_store %arg7[%c6_29, %c0_30], %86 {strides = array<i32>} : memref<16x32xf32, #tpu.memory_space<vmem>>, vector<2x32xf32>,
    %c8 = arith.constant 8 : index
    %c0_31 = arith.constant 0 : index
    %88 = vector.load %arg8[%c8, %c0_31] : memref<16x128xf32, #tpu.memory_space<vmem>>, vector<2x128xf32>
    %cst_32 = arith.constant dense<0.000000e+00> : vector<2x128xf32>
    %89 = tpu.matmul %86, %9, %cst_32 {dimension_numbers = #tpu.dot_dimension_numbers<[1], [0], [0], [1], [0, 0, 1, 1], [], []>} : vector<2x32xf32>, vector<32x128xf32>, vector<2x128xf32> -> vector<2x128xf32>
    %90 = arith.addf %89, %88 : vector<2x128xf32>
    %91 = arith.negf %90 : vector<2x128xf32>
    %92 = math.exp %91 : vector<2x128xf32>
    %cst_33 = arith.constant 1.000000e+00 : f32
    %93 = vector.broadcast %cst_33 : f32 to vector<2x128xf32>
    %94 = arith.addf %93, %92 : vector<2x128xf32>
    %95 = arith.divf %93, %94 : vector<2x128xf32>
    %96 = vector.extract_strided_slice %95 {offsets = [0, 0], sizes = [2, 32], strides = [1, 1]} : vector<2x128xf32> to vector<2x32xf32>
    %97 = vector.extract_strided_slice %95 {offsets = [0, 32], sizes = [2, 32], strides = [1, 1]} : vector<2x128xf32> to vector<2x32xf32>
    %98 = vector.extract_strided_slice %95 {offsets = [0, 96], sizes = [2, 32], strides = [1, 1]} : vector<2x128xf32> to vector<2x32xf32>
    %99 = vector.extract_strided_slice %90 {offsets = [0, 64], sizes = [2, 32], strides = [1, 1]} : vector<2x128xf32> to vector<2x32xf32>
    %100 = math.tanh %99 : vector<2x32xf32>
    %101 = arith.mulf %97, %84 : vector<2x32xf32>
    %102 = arith.mulf %96, %100 : vector<2x32xf32>
    %103 = arith.addf %101, %102 : vector<2x32xf32>
    %104 = math.tanh %103 : vector<2x32xf32>
    %105 = arith.mulf %98, %104 : vector<2x32xf32>
    %c8_34 = arith.constant 8 : index
    %c0_35 = arith.constant 0 : index
    %106 = vector.load %arg7[%c8_34, %c0_35] : memref<16x32xf32, #tpu.memory_space<vmem>>, vector<2x32xf32>
    tpu.vector_store %arg7[%c8_34, %c0_35], %105 {strides = array<i32>} : memref<16x32xf32, #tpu.memory_space<vmem>>, vector<2x32xf32>,
    %c10 = arith.constant 10 : index
    %c0_36 = arith.constant 0 : index
    %107 = vector.load %arg8[%c10, %c0_36] : memref<16x128xf32, #tpu.memory_space<vmem>>, vector<2x128xf32>
    %cst_37 = arith.constant dense<0.000000e+00> : vector<2x128xf32>
    %108 = tpu.matmul %105, %9, %cst_37 {dimension_numbers = #tpu.dot_dimension_numbers<[1], [0], [0], [1], [0, 0, 1, 1], [], []>} : vector<2x32xf32>, vector<32x128xf32>, vector<2x128xf32> -> vector<2x128xf32>
    %109 = arith.addf %108, %107 : vector<2x128xf32>
    %110 = arith.negf %109 : vector<2x128xf32>
    %111 = math.exp %110 : vector<2x128xf32>
    %cst_38 = arith.constant 1.000000e+00 : f32
    %112 = vector.broadcast %cst_38 : f32 to vector<2x128xf32>
    %113 = arith.addf %112, %111 : vector<2x128xf32>
    %114 = arith.divf %112, %113 : vector<2x128xf32>
    %115 = vector.extract_strided_slice %114 {offsets = [0, 0], sizes = [2, 32], strides = [1, 1]} : vector<2x128xf32> to vector<2x32xf32>
    %116 = vector.extract_strided_slice %114 {offsets = [0, 32], sizes = [2, 32], strides = [1, 1]} : vector<2x128xf32> to vector<2x32xf32>
    %117 = vector.extract_strided_slice %114 {offsets = [0, 96], sizes = [2, 32], strides = [1, 1]} : vector<2x128xf32> to vector<2x32xf32>
    %118 = vector.extract_strided_slice %109 {offsets = [0, 64], sizes = [2, 32], strides = [1, 1]} : vector<2x128xf32> to vector<2x32xf32>
    %119 = math.tanh %118 : vector<2x32xf32>
    %120 = arith.mulf %116, %103 : vector<2x32xf32>
    %121 = arith.mulf %115, %119 : vector<2x32xf32>
    %122 = arith.addf %120, %121 : vector<2x32xf32>
    %123 = math.tanh %122 : vector<2x32xf32>
    %124 = arith.mulf %117, %123 : vector<2x32xf32>
    %c10_39 = arith.constant 10 : index
    %c0_40 = arith.constant 0 : index
    %125 = vector.load %arg7[%c10_39, %c0_40] : memref<16x32xf32, #tpu.memory_space<vmem>>, vector<2x32xf32>
    tpu.vector_store %arg7[%c10_39, %c0_40], %124 {strides = array<i32>} : memref<16x32xf32, #tpu.memory_space<vmem>>, vector<2x32xf32>,
    %c12 = arith.constant 12 : index
    %c0_41 = arith.constant 0 : index
    %126 = vector.load %arg8[%c12, %c0_41] : memref<16x128xf32, #tpu.memory_space<vmem>>, vector<2x128xf32>
    %cst_42 = arith.constant dense<0.000000e+00> : vector<2x128xf32>
    %127 = tpu.matmul %124, %9, %cst_42 {dimension_numbers = #tpu.dot_dimension_numbers<[1], [0], [0], [1], [0, 0, 1, 1], [], []>} : vector<2x32xf32>, vector<32x128xf32>, vector<2x128xf32> -> vector<2x128xf32>
    %128 = arith.addf %127, %126 : vector<2x128xf32>
    %129 = arith.negf %128 : vector<2x128xf32>
    %130 = math.exp %129 : vector<2x128xf32>
    %cst_43 = arith.constant 1.000000e+00 : f32
    %131 = vector.broadcast %cst_43 : f32 to vector<2x128xf32>
    %132 = arith.addf %131, %130 : vector<2x128xf32>
    %133 = arith.divf %131, %132 : vector<2x128xf32>
    %134 = vector.extract_strided_slice %133 {offsets = [0, 0], sizes = [2, 32], strides = [1, 1]} : vector<2x128xf32> to vector<2x32xf32>
    %135 = vector.extract_strided_slice %133 {offsets = [0, 32], sizes = [2, 32], strides = [1, 1]} : vector<2x128xf32> to vector<2x32xf32>
    %136 = vector.extract_strided_slice %133 {offsets = [0, 96], sizes = [2, 32], strides = [1, 1]} : vector<2x128xf32> to vector<2x32xf32>
    %137 = vector.extract_strided_slice %128 {offsets = [0, 64], sizes = [2, 32], strides = [1, 1]} : vector<2x128xf32> to vector<2x32xf32>
    %138 = math.tanh %137 : vector<2x32xf32>
    %139 = arith.mulf %135, %122 : vector<2x32xf32>
    %140 = arith.mulf %134, %138 : vector<2x32xf32>
    %141 = arith.addf %139, %140 : vector<2x32xf32>
    %142 = math.tanh %141 : vector<2x32xf32>
    %143 = arith.mulf %136, %142 : vector<2x32xf32>
    %c12_44 = arith.constant 12 : index
    %c0_45 = arith.constant 0 : index
    %144 = vector.load %arg7[%c12_44, %c0_45] : memref<16x32xf32, #tpu.memory_space<vmem>>, vector<2x32xf32>
    tpu.vector_store %arg7[%c12_44, %c0_45], %143 {strides = array<i32>} : memref<16x32xf32, #tpu.memory_space<vmem>>, vector<2x32xf32>,
    %c14 = arith.constant 14 : index
    %c0_46 = arith.constant 0 : index
    %145 = vector.load %arg8[%c14, %c0_46] : memref<16x128xf32, #tpu.memory_space<vmem>>, vector<2x128xf32>
    %cst_47 = arith.constant dense<0.000000e+00> : vector<2x128xf32>
    %146 = tpu.matmul %143, %9, %cst_47 {dimension_numbers = #tpu.dot_dimension_numbers<[1], [0], [0], [1], [0, 0, 1, 1], [], []>} : vector<2x32xf32>, vector<32x128xf32>, vector<2x128xf32> -> vector<2x128xf32>
    %147 = arith.addf %146, %145 : vector<2x128xf32>
    %148 = arith.negf %147 : vector<2x128xf32>
    %149 = math.exp %148 : vector<2x128xf32>
    %cst_48 = arith.constant 1.000000e+00 : f32
    %150 = vector.broadcast %cst_48 : f32 to vector<2x128xf32>
    %151 = arith.addf %150, %149 : vector<2x128xf32>
    %152 = arith.divf %150, %151 : vector<2x128xf32>
    %153 = vector.extract_strided_slice %152 {offsets = [0, 0], sizes = [2, 32], strides = [1, 1]} : vector<2x128xf32> to vector<2x32xf32>
    %154 = vector.extract_strided_slice %152 {offsets = [0, 32], sizes = [2, 32], strides = [1, 1]} : vector<2x128xf32> to vector<2x32xf32>
    %155 = vector.extract_strided_slice %152 {offsets = [0, 96], sizes = [2, 32], strides = [1, 1]} : vector<2x128xf32> to vector<2x32xf32>
    %156 = vector.extract_strided_slice %147 {offsets = [0, 64], sizes = [2, 32], strides = [1, 1]} : vector<2x128xf32> to vector<2x32xf32>
    %157 = math.tanh %156 : vector<2x32xf32>
    %158 = arith.mulf %154, %141 : vector<2x32xf32>
    %159 = arith.mulf %153, %157 : vector<2x32xf32>
    %160 = arith.addf %158, %159 : vector<2x32xf32>
    %161 = math.tanh %160 : vector<2x32xf32>
    %162 = arith.mulf %155, %161 : vector<2x32xf32>
    %c14_49 = arith.constant 14 : index
    %c0_50 = arith.constant 0 : index
    %163 = vector.load %arg7[%c14_49, %c0_50] : memref<16x32xf32, #tpu.memory_space<vmem>>, vector<2x32xf32>
    tpu.vector_store %arg7[%c14_49, %c0_50], %162 {strides = array<i32>} : memref<16x32xf32, #tpu.memory_space<vmem>>, vector<2x32xf32>,
    %c0_51 = arith.constant 0 : index
    %c0_52 = arith.constant 0 : index
    %164 = vector.load %arg7[%c0_51, %c0_52] : memref<16x32xf32, #tpu.memory_space<vmem>>, vector<16x32xf32>
    %c0_53 = arith.constant 0 : index
    %c0_54 = arith.constant 0 : index
    %165 = vector.load %arg4[%c0_53, %c0_54] : memref<32x1xf32, #tpu.memory_space<vmem>>, vector<32x1xf32>
    %cst_55 = arith.constant dense<0.000000e+00> : vector<16x1xf32>
    %166 = tpu.matmul %164, %165, %cst_55 {dimension_numbers = #tpu.dot_dimension_numbers<[1], [0], [0], [1], [0, 0, 1, 1], [], []>} : vector<16x32xf32>, vector<32x1xf32>, vector<16x1xf32> -> vector<16x1xf32>
    %c0_56 = arith.constant 0 : index
    %167 = memref.load %arg5[%c0_56] : memref<1xf32, #tpu.memory_space<smem>>
    %168 = vector.broadcast %167 : f32 to vector<16x1xf32>
    %169 = arith.addf %166, %168 : vector<16x1xf32>
    %c0_57 = arith.constant 0 : index
    %c0_58 = arith.constant 0 : index
    %170 = vector.load %arg6[%c0_57, %c0_58] : memref<16x1xf32, #tpu.memory_space<vmem>>, vector<16x1xf32>
    tpu.vector_store %arg6[%c0_57, %c0_58], %169 {strides = array<i32>} : memref<16x1xf32, #tpu.memory_space<vmem>>, vector<16x1xf32>,
    return
  }
}

</mosaic_0001>

<bundles_post_ra>
// kernel: tpu_custom_call.1
= control target key start
LH: loop header
LB: loop body
LE: loop exit
PB: predicated region body
PF: predicated region fallthrough
CT: control target
= control target key end

     0   :  { %v1267_v0 = vmov 0.0|0.0   ;;  %vm1268_vm0 = vmmov 0   ;;  %v1269_v4 = vmov 0.0   ;;  %v1270_v7 = vmov 0   ;;  %s1271_s10 = smov 64   ;;  %s1463_s2 = inlined_call_operand.vmem [shape: f32[32,128], index: 2, kind: input, shape index: {}]   ;;  %s1464_s0 = inlined_call_operand.vmem [shape: f32[16,1], index: 0, kind: input, shape index: {}]   ;;  %s1465_s1 = inlined_call_operand.vmem [shape: f32[1,128], index: 1, kind: input, shape index: {}]   ;;  %s1466_s3 = inlined_call_operand.vmem [shape: f32[1,128], index: 3, kind: input, shape index: {}]   ;;  %s1467_s4 = inlined_call_operand.vmem [shape: f32[32,1], index: 4, kind: input, shape index: {}]   ;;  %s1468_s5 = inlined_call_operand.<no memory space> [shape: f32[1], index: 5, kind: input, shape index: {}]   ;;  %s1469_s6 = inlined_call_operand.vmem [shape: f32[16,1], index: 6, kind: output, shape index: {}]  }
   0x1   :  { %1139 = vmatprep.subr.bf16.mxu0 %v1267_v0  ;;  %v56_v1 = vld [vmem:[%s1463_s2] sm:$0xff]  ;;  %v57_v2 = vld [vmem:[%s1463_s2 + $0x8] sm:$0xff]  ;;  %v58_v3 = vld [vmem:[%s1463_s2 + $0x10] sm:$0xff]  ;;  %1048 = vmatprep.mubr.msk.f32.mxu0 %vm1268_vm0, %v1269_v4  ;;  %vm163_vm1 = vcmask 254976   ;;  %vm61_vm2 = vcmask 261120   ;;  %vm968_vm3 = vcmask 7168  }
   0x2   :  { %v1320_v5 = vpack.c.bf16 %v57_v2, %v56_v1  ;;  %v59_v6 = vld [vmem:[%s1463_s2 + $0x18] sm:$0xff]  ;;  %1201 = vset.pattern.permute.xlu0 %v1270_v7  ;;  %v24_v8 = vld [vmem:[%s1464_s0] sm:$0xff]  ;;  %1145 = vmatprep.subr.bf16.mxu1 %v1267_v0 }
   0x3   :  { %29 = vperm.xlu0 %1201, %v24_v8   ;;  %1059 = vmatprep.mubr.msk.f32.mxu1 %vm1268_vm0, %v1269_v4  ;;  %v1332_v9 = vpack.c.bf16 %v59_v6, %v58_v3  ;;  %v1351_v10 = vld [vmem:[%s1465_s1] ss:$0 sm:$0xff]  ;;  %s1272_s1 = smov 32  }
   0x4   :  { %1141 = vmatpush3.bf16.msra.mxu0 %v1320_v5  ;;  %1147 = vmatpush3.bf16.msra.mxu1 %v1320_v5  ;;  %v1356_v11 = vld [vmem:[%s1466_s3] ss:$0 sm:$0xff] }
   0x5   :  { %1142 = vmatprep.subr.bf16.mxu0 %v1267_v0  ;;  %1148 = vmatprep.subr.bf16.mxu1 %v1267_v0 }
   0x6   :  { %1202 = vset.pattern.permute.xlu1 %v1270_v7 }
   0x8   :  { %1144 = vmatpush3.bf16.msra.mxu0 %v1332_v9  ;;  %1150 = vmatpush3.bf16.msra.mxu1 %v1332_v9 }
   0x9   :  { %1151 = vmatprep.subr.bf16.mxu0 %v1267_v0  ;;  %1157 = vmatprep.subr.bf16.mxu1 %v1267_v0 }
   0xb   :  { %1049 = vmatmul.mubr.f32.vlgmr.msra.gmra.mrb[0].mxu0 %v1269_v4 }
   0xc   :  { %1153 = vmatpush3.bf16.msra.mxu0 %v1320_v5  ;;  %1070 = vmatprep.mubr.msk.f32.mxu0 %vm1268_vm0, %v1269_v4 }
   0xd   :  { %1154 = vmatprep.subr.bf16.mxu0 %v1267_v0 }
  0x10   :  { %1156 = vmatpush3.bf16.msra.mxu0 %v1332_v9 }
  0x11   :  { %1163 = vmatprep.subr.bf16.mxu0 %v1267_v0 }
  0x82   :  { %v30_v12 = vpop.permute.xlu0 %29 }
  0x83   :  { %v43_v13 = vmul.f32 %v1351_v10, %v30_v12 }
  0x85   :  { %v52_v14 = vadd.f32 %v1356_v11, %v43_v13 }
  0x87   :  { %54 = vst [vmem:[#allocation3] sm:$0xff] %v52_v14 }
  0x8e   :  { %v60_v15 = vld [vmem:[#allocation3] sm:$0x3]  ;;  %v165_v33 = vld [vmem:[#allocation3 + $0x2] sm:$0x3]  ;;  %v267_v51 = vld [vmem:[#allocation3 + $0x4] sm:$0x3] }
  0x8f   :  { %v369_v8 = vld [vmem:[#allocation3 + $0x6] sm:$0x3] }
  0xde   :  { %v131_v16 = vpop.f32.mrb[0].mxu0 }
  0xdf   :  { %v132_v17 = vadd.f32 %v131_v16, %v60_v15  ;;  %v1050_v18 = vpop.f32.mrb[1].mxu0 }
  0xe1   :  { %1203 = vtanh.f32 %v132_v17  ;;  %v977_v20 = vmul.f32 -1.442695, %v132_v17 }
  0xe3   :  { %1205 = vpow2.f32 %v977_v20 }
  0xeb   :  { %v1204_v19 = vpop.eup %1203 }
  0xec   :  { %144 = vrot.lane.b32.xlu0 %v1204_v19, %s1271_s10 }
  0xed   :  { %v1206_v21 = vpop.eup %1205 }
  0xee   :  { %v138_v22 = vadd.f32 1.0, %v1206_v21 }
  0xf0   :  { %1207 = vrcp.f32 %v138_v22 }
  0xfa   :  { %v1208_v23 = vpop.eup %1207 }
  0xfb   :  { %v142_v26 = vmul.f32 0.0, %v1208_v23 }
 0x15e   :  { %v145_v24 = vpop.permute.xlu0 %144 }
 0x15f   :  { %v147_v25 = vmul.f32 %v1208_v23, %v145_v24 }
 0x161   :  { %149 = vrot.lane.b32.xlu1 %v147_v25, %s1272_s1 }
 0x1d3   :  { %v150_v27 = vpop.permute.xlu1 %149 }
 0x1d4   :  { %v152_v28 = vadd.f32 %v150_v27, %v142_v26  ;;  %v25_v26 = vld [vmem:[%s1464_s0 + $0x8] sm:$0xff] }
 0x1d6   :  { %1209 = vtanh.f32 %v152_v28 }
 0x1e0   :  { %v1210_v29 = vpop.eup %1209 }
 0x1e1   :  { %155 = vrot.lane.b32.xlu1 %v1210_v29, %s1271_s10 }
 0x253   :  { %v156_v30 = vpop.permute.xlu1 %155 }
 0x254   :  { %v158_v31 = vmul.f32 %v1208_v23, %v156_v30 }
 0x256   :  { %160 = vrot.lane.b32.xlu0 %v158_v31, %s1272_s1 }
 0x2c8   :  { %v161_v32 = vpop.permute.xlu0 %160 }
 0x2c9   :  { %164 = vst.msk [vmem:[#allocation2] sm:$0x3] %vm163_vm1, %v161_v32  ;;  %1060 = vmatmul.mubr.msk.f32.vlgmr.msra.gmra.mrb[0].mxu1 %vm61_vm2, %v161_v32 }
 0x2ca   :  { %1159 = vmatpush3.bf16.msra.mxu1 %v1320_v5  ;;  %1081 = vmatprep.mubr.msk.f32.mxu1 %vm1268_vm0, %v1269_v4 }
 0x2cb   :  { %1160 = vmatprep.subr.bf16.mxu1 %v1267_v0 }
 0x2ce   :  { %1162 = vmatpush3.bf16.msra.mxu1 %v1332_v9 }
 0x2cf   :  { %1169 = vmatprep.subr.bf16.mxu1 %v1267_v0 }
 0x39c   :  { %v234_v34 = vpop.f32.mrb[0].mxu1 }
 0x39d   :  { %v235_v35 = vadd.f32 %v234_v34, %v165_v33  ;;  %v1061_v36 = vpop.f32.mrb[1].mxu1 }
 0x39f   :  { %1211 = vtanh.f32 %v235_v35  ;;  %v979_v38 = vmul.f32 -1.442695, %v235_v35 }
 0x3a1   :  { %1213 = vpow2.f32 %v979_v38 }
 0x3a9   :  { %v1212_v37 = vpop.eup %1211 }
 0x3aa   :  { %247 = vrot.lane.b32.xlu1 %v1212_v37, %s1271_s10 }
 0x3ab   :  { %v1214_v39 = vpop.eup %1213 }
 0x3ac   :  { %v241_v40 = vadd.f32 1.0, %v1214_v39 }
 0x3ae   :  { %1215 = vrcp.f32 %v241_v40 }
 0x3b8   :  { %v1216_v41 = vpop.eup %1215 }
 0x3b9   :  { %v245_v44 = vmul.f32 %v1216_v41, %v152_v28 }
 0x41c   :  { %v248_v42 = vpop.permute.xlu1 %247 }
 0x41d   :  { %v250_v43 = vmul.f32 %v1216_v41, %v248_v42 }
 0x41f   :  { %252 = vrot.lane.b32.xlu0 %v250_v43, %s1272_s1 }
 0x491   :  { %v253_v45 = vpop.permute.xlu0 %252 }
 0x492   :  { %v255_v46 = vadd.f32 %v253_v45, %v245_v44 }
 0x494   :  { %1217 = vtanh.f32 %v255_v46 }
 0x49e   :  { %v1218_v47 = vpop.eup %1217 }
 0x49f   :  { %258 = vrot.lane.b32.xlu1 %v1218_v47, %s1271_s10 }
 0x511   :  { %v259_v48 = vpop.permute.xlu1 %258 }
 0x512   :  { %v261_v49 = vmul.f32 %v1216_v41, %v259_v48 }
 0x514   :  { %263 = vrot.lane.b32.xlu0 %v261_v49, %s1272_s1 }
 0x586   :  { %v264_v50 = vpop.permute.xlu0 %263 }
 0x587   :  { %266 = vst.msk [vmem:[#allocation2 + $0x2] sm:$0x3] %vm163_vm1, %v264_v50  ;;  %1071 = vmatmul.mubr.msk.f32.vlgmr.msra.gmra.mrb[2].mxu0 %vm61_vm2, %v264_v50 }
 0x588   :  { %1165 = vmatpush3.bf16.msra.mxu0 %v1320_v5  ;;  %1092 = vmatprep.mubr.msk.f32.mxu0 %vm1268_vm0, %v1269_v4 }
 0x589   :  { %1166 = vmatprep.subr.bf16.mxu0 %v1267_v0 }
 0x58c   :  { %1168 = vmatpush3.bf16.msra.mxu0 %v1332_v9 }
 0x58d   :  { %1175 = vmatprep.subr.bf16.mxu0 %v1267_v0 }
 0x65a   :  { %v336_v52 = vpop.f32.mrb[2].mxu0 }
 0x65b   :  { %v337_v53 = vadd.f32 %v336_v52, %v267_v51  ;;  %v1072_v54 = vpop.f32.mrb[3].mxu0 }
 0x65d   :  { %1219 = vtanh.f32 %v337_v53  ;;  %v981_v56 = vmul.f32 -1.442695, %v337_v53 }
 0x65f   :  { %1221 = vpow2.f32 %v981_v56 }
 0x667   :  { %v1220_v55 = vpop.eup %1219 }
 0x668   :  { %349 = vrot.lane.b32.xlu1 %v1220_v55, %s1271_s10 }
 0x669   :  { %v1222_v57 = vpop.eup %1221 }
 0x66a   :  { %v343_v58 = vadd.f32 1.0, %v1222_v57 }
 0x66c   :  { %1223 = vrcp.f32 %v343_v58 }
 0x676   :  { %v1224_v59 = vpop.eup %1223 }
 0x677   :  { %v347_v62 = vmul.f32 %v1224_v59, %v255_v46 }
 0x6da   :  { %v350_v60 = vpop.permute.xlu1 %349 }
 0x6db   :  { %v352_v61 = vmul.f32 %v1224_v59, %v350_v60 }
 0x6dd   :  { %354 = vrot.lane.b32.xlu0 %v352_v61, %s1272_s1 }
 0x74f   :  { %v355_v63 = vpop.permute.xlu0 %354 }
 0x750   :  { %v357_v1 = vadd.f32 %v355_v63, %v347_v62 }
 0x752   :  { %1225 = vtanh.f32 %v357_v1 }
 0x75c   :  { %v1226_v2 = vpop.eup %1225 }
 0x75d   :  { %360 = vrot.lane.b32.xlu1 %v1226_v2, %s1271_s10 }
 0x7cf   :  { %v361_v3 = vpop.permute.xlu1 %360 }
 0x7d0   :  { %v363_v6 = vmul.f32 %v1224_v59, %v361_v3 }
 0x7d2   :  { %365 = vrot.lane.b32.xlu0 %v363_v6, %s1272_s1 }
 0x844   :  { %v366_v7 = vpop.permute.xlu0 %365 }
 0x845   :  { %368 = vst.msk [vmem:[#allocation2 + $0x4] sm:$0x3] %vm163_vm1, %v366_v7  ;;  %1082 = vmatmul.mubr.msk.f32.vlgmr.msra.gmra.mrb[2].mxu1 %vm61_vm2, %v366_v7 }
 0x846   :  { %1171 = vmatpush3.bf16.msra.mxu1 %v1320_v5  ;;  %1103 = vmatprep.mubr.msk.f32.mxu1 %vm1268_vm0, %v1269_v4 }
 0x847   :  { %1172 = vmatprep.subr.bf16.mxu1 %v1267_v0 }
 0x84a   :  { %1174 = vmatpush3.bf16.msra.mxu1 %v1332_v9 }
 0x84b   :  { %1181 = vmatprep.subr.bf16.mxu1 %v1267_v0 }
 0x918   :  { %v438_v12 = vpop.f32.mrb[2].mxu1 }
 0x919   :  { %v439_v13 = vadd.f32 %v438_v12, %v369_v8  ;;  %v1083_v14 = vpop.f32.mrb[3].mxu1 }
 0x91b   :  { %1227 = vtanh.f32 %v439_v13  ;;  %v983_v16 = vmul.f32 -1.442695, %v439_v13 }
 0x91d   :  { %1229 = vpow2.f32 %v983_v16 }
 0x925   :  { %v1228_v15 = vpop.eup %1227 }
 0x926   :  { %451 = vrot.lane.b32.xlu1 %v1228_v15, %s1271_s10 }
 0x927   :  { %v1230_v17 = vpop.eup %1229 }
 0x928   :  { %v445_v18 = vadd.f32 1.0, %v1230_v17 }
 0x92a   :  { %1231 = vrcp.f32 %v445_v18 }
 0x934   :  { %v1232_v19 = vpop.eup %1231 }
 0x935   :  { %v449_v22 = vmul.f32 %v1232_v19, %v357_v1 }
 0x998   :  { %v452_v20 = vpop.permute.xlu1 %451 }
 0x999   :  { %v454_v21 = vmul.f32 %v1232_v19, %v452_v20 }
 0x99b   :  { %456 = vrot.lane.b32.xlu0 %v454_v21, %s1272_s1 }
 0xa0d   :  { %v457_v23 = vpop.permute.xlu0 %456 }
 0xa0e   :  { %v459_v24 = vadd.f32 %v457_v23, %v449_v22 }
 0xa10   :  { %1233 = vtanh.f32 %v459_v24 }
 0xa1a   :  { %v1234_v25 = vpop.eup %1233 }
 0xa1b   :  { %462 = vrot.lane.b32.xlu1 %v1234_v25, %s1271_s10 }
 0xa1f   :  { %34 = vperm.xlu1 %1202, %v25_v26  }
 0xa8d   :  { %v463_v27 = vpop.permute.xlu1 %462 }
 0xa8e   :  { %v465_v28 = vmul.f32 %v1232_v19, %v463_v27 }
 0xa90   :  { %467 = vrot.lane.b32.xlu0 %v465_v28, %s1272_s1 }
 0xa9e   :  { %v35_v30 = vpop.permute.xlu1 %34 }
 0xa9f   :  { %v44_v31 = vmul.f32 %v1351_v10, %v35_v30 }
 0xaa1   :  { %v53_v32 = vadd.f32 %v1356_v11, %v44_v31 }
 0xaa3   :  { %55 = vst [vmem:[#allocation3 + $0x8] sm:$0xff] %v53_v32 }
 0xaaa   :  { %v471_v33 = vld [vmem:[#allocation3 + $0x8] sm:$0x3]  ;;  %v573_v49 = vld [vmem:[#allocation3 + $0xa] sm:$0x3]  ;;  %v675_v1 = vld [vmem:[#allocation3 + $0xc] sm:$0x3] }
 0xb02   :  { %v468_v29 = vpop.permute.xlu0 %467 }
 0xb03   :  { %470 = vst.msk [vmem:[#allocation2 + $0x6] sm:$0x3] %vm163_vm1, %v468_v29  ;;  %1093 = vmatmul.mubr.msk.f32.vlgmr.msra.gmra.mrb[4].mxu0 %vm61_vm2, %v468_v29 }
 0xb04   :  { %1177 = vmatpush3.bf16.msra.mxu0 %v1320_v5  ;;  %1114 = vmatprep.mubr.msk.f32.mxu0 %vm1268_vm0, %v1269_v4 }
 0xb05   :  { %1178 = vmatprep.subr.bf16.mxu0 %v1267_v0 }
 0xb08   :  { %1180 = vmatpush3.bf16.msra.mxu0 %v1332_v9 }
 0xb0a   :  { %v879_v63 = vld [vmem:[#allocation2] sm:$0xff] }
 0xbd6   :  { %v540_v34 = vpop.f32.mrb[4].mxu0 }
 0xbd7   :  { %v541_v35 = vadd.f32 %v540_v34, %v471_v33  ;;  %v1094_v36 = vpop.f32.mrb[5].mxu0 }
 0xbd9   :  { %1235 = vtanh.f32 %v541_v35  ;;  %v985_v10 = vmul.f32 -1.442695, %v541_v35 }
 0xbdb   :  { %1237 = vpow2.f32 %v985_v10 }
 0xbe3   :  { %v1236_v37 = vpop.eup %1235 }
 0xbe4   :  { %553 = vrot.lane.b32.xlu0 %v1236_v37, %s1271_s10 }
 0xbe5   :  { %v1238_v38 = vpop.eup %1237 }
 0xbe6   :  { %v547_v39 = vadd.f32 1.0, %v1238_v38  ;;  %v881_v38 = vld [vmem:[%s1467_s4] sm:$0xff] }
 0xbe8   :  { %1239 = vrcp.f32 %v547_v39  ;;  %v882_v39 = vld [vmem:[%s1467_s4 + $0x8] sm:$0xff] }
 0xbf2   :  { %v1240_v40 = vpop.eup %1239 }
 0xbf3   :  { %v551_v11 = vmul.f32 %v1240_v40, %v459_v24  ;;  %v777_v24 = vld [vmem:[#allocation3 + $0xe] sm:$0x3] }
 0xc56   :  { %v554_v41 = vpop.permute.xlu0 %553 }
 0xc57   :  { %v556_v42 = vmul.f32 %v1240_v40, %v554_v41  ;;  %v883_v41 = vld [vmem:[%s1467_s4 + $0x10] sm:$0xff] }
 0xc59   :  { %558 = vrot.lane.b32.xlu1 %v556_v42, %s1272_s1  ;;  %v884_v42 = vld [vmem:[%s1467_s4 + $0x18] sm:$0xff] }
 0xccb   :  { %v559_v43 = vpop.permute.xlu1 %558 }
 0xccc   :  { %v561_v44 = vadd.f32 %v559_v43, %v551_v11  ;;  %v1191_v11 = vpack.c.bf16 %v884_v42, %v883_v41 }
 0xcce   :  { %1241 = vtanh.f32 %v561_v44 }
 0xcd8   :  { %v1242_v45 = vpop.eup %1241 }
 0xcd9   :  { %564 = vrot.lane.b32.xlu0 %v1242_v45, %s1271_s10 }
 0xd4b   :  { %v565_v46 = vpop.permute.xlu0 %564 }
 0xd4c   :  { %v567_v47 = vmul.f32 %v1240_v40, %v565_v46  ;;  %v1187_v40 = vpack.c.bf16 %v882_v39, %v881_v38 }
 0xd4e   :  { %569 = vrot.lane.b32.xlu1 %v567_v47, %s1272_s1  ;;  %1188 = vmatprep.subr.bf16.mxu0 %v1187_v40  ;;  %v886_v47 = vstv %s1468_s5 }
 0xdc0   :  { %v570_v48 = vpop.permute.xlu1 %569 }
 0xdc1   :  { %572 = vst.msk [vmem:[#allocation2 + $0x8] sm:$0x3] %vm163_vm1, %v570_v48  ;;  %1104 = vmatmul.mubr.msk.f32.vlgmr.msra.gmra.mrb[4].mxu1 %vm61_vm2, %v570_v48 }
 0xdc2   :  { %1183 = vmatpush3.bf16.msra.mxu1 %v1320_v5  ;;  %1125 = vmatprep.mubr.msk.f32.mxu1 %vm1268_vm0, %v1269_v4 }
 0xdc3   :  { %1184 = vmatprep.subr.bf16.mxu1 %v1267_v0 }
 0xdc6   :  { %1186 = vmatpush3.bf16.msra.mxu1 %v1332_v9 }
 0xe94   :  { %v642_v50 = vpop.f32.mrb[4].mxu1 }
 0xe95   :  { %v643_v51 = vadd.f32 %v642_v50, %v573_v49  ;;  %v1105_v52 = vpop.f32.mrb[5].mxu1 }
 0xe97   :  { %1243 = vtanh.f32 %v643_v51  ;;  %v987_v54 = vmul.f32 -1.442695, %v643_v51 }
 0xe99   :  { %1245 = vpow2.f32 %v987_v54 }
 0xea1   :  { %v1244_v53 = vpop.eup %1243 }
 0xea2   :  { %655 = vrot.lane.b32.xlu0 %v1244_v53, %s1271_s10 }
 0xea3   :  { %v1246_v55 = vpop.eup %1245 }
 0xea4   :  { %v649_v56 = vadd.f32 1.0, %v1246_v55 }
 0xea6   :  { %1247 = vrcp.f32 %v649_v56 }
 0xeb0   :  { %v1248_v5 = vpop.eup %1247 }
 0xeb1   :  { %v653_v0 = vmul.f32 %v1248_v5, %v561_v44 }
 0xf14   :  { %v656_v57 = vpop.permute.xlu0 %655 }
 0xf15   :  { %v658_v4 = vmul.f32 %v1248_v5, %v656_v57 }
 0xf17   :  { %660 = vrot.lane.b32.xlu1 %v658_v4, %s1272_s1 }
 0xf89   :  { %v661_v9 = vpop.permute.xlu1 %660 }
 0xf8a   :  { %v663_v58 = vadd.f32 %v661_v9, %v653_v0 }
 0xf8c   :  { %1249 = vtanh.f32 %v663_v58 }
 0xf96   :  { %v1250_v59 = vpop.eup %1249 }
 0xf97   :  { %666 = vrot.lane.b32.xlu0 %v1250_v59, %s1271_s10 }
0x1009   :  { %v667_v60 = vpop.permute.xlu0 %666 }
0x100a   :  { %v669_v61 = vmul.f32 %v1248_v5, %v667_v60 }
0x100c   :  { %671 = vrot.lane.b32.xlu1 %v669_v61, %s1272_s1 }
0x107e   :  { %v672_v62 = vpop.permute.xlu1 %671 }
0x107f   :  { %674 = vst.msk [vmem:[#allocation2 + $0xa] sm:$0x3] %vm163_vm1, %v672_v62  ;;  %1115 = vmatmul.mubr.msk.f32.vlgmr.msra.gmra.mrb[6].mxu0 %vm61_vm2, %v672_v62 }
0x1080   :  { %1136 = vmatprep.mubr.msk.f32.mxu0 %vm61_vm2, %v879_v63  ;;  %1190 = vmatpush3.bf16.msra.mxu0 %v1187_v40 }
0x1081   :  { %1192 = vmatprep.subr.bf16.mxu0 %v1191_v11 }
0x1084   :  { %1194 = vmatpush3.bf16.msra.mxu0 %v1191_v11 }
0x1152   :  { %v744_v2 = vpop.f32.mrb[6].mxu0 }
0x1153   :  { %v745_v3 = vadd.f32 %v744_v2, %v675_v1  ;;  %v1116_v6 = vpop.f32.mrb[7].mxu0 }
0x1155   :  { %1251 = vtanh.f32 %v745_v3  ;;  %v989_v8 = vmul.f32 -1.442695, %v745_v3 }
0x1157   :  { %1253 = vpow2.f32 %v989_v8 }
0x115f   :  { %v1252_v7 = vpop.eup %1251 }
0x1160   :  { %757 = vrot.lane.b32.xlu0 %v1252_v7, %s1271_s10 }
0x1161   :  { %v1254_v12 = vpop.eup %1253 }
0x1162   :  { %v751_v13 = vadd.f32 1.0, %v1254_v12 }
0x1164   :  { %1255 = vrcp.f32 %v751_v13 }
0x116e   :  { %v1256_v14 = vpop.eup %1255 }
0x116f   :  { %v755_v17 = vmul.f32 %v1256_v14, %v663_v58 }
0x11d2   :  { %v758_v15 = vpop.permute.xlu0 %757 }
0x11d3   :  { %v760_v16 = vmul.f32 %v1256_v14, %v758_v15 }
0x11d5   :  { %762 = vrot.lane.b32.xlu1 %v760_v16, %s1272_s1 }
0x1247   :  { %v763_v18 = vpop.permute.xlu1 %762 }
0x1248   :  { %v765_v19 = vadd.f32 %v763_v18, %v755_v17 }
0x124a   :  { %1257 = vtanh.f32 %v765_v19 }
0x1254   :  { %v1258_v20 = vpop.eup %1257 }
0x1255   :  { %768 = vrot.lane.b32.xlu0 %v1258_v20, %s1271_s10 }
0x12c7   :  { %v769_v21 = vpop.permute.xlu0 %768 }
0x12c8   :  { %v771_v22 = vmul.f32 %v1256_v14, %v769_v21 }
0x12ca   :  { %773 = vrot.lane.b32.xlu1 %v771_v22, %s1272_s1 }
0x133c   :  { %v774_v23 = vpop.permute.xlu1 %773 }
0x133d   :  { %776 = vst.msk [vmem:[#allocation2 + $0xc] sm:$0x3] %vm163_vm1, %v774_v23  ;;  %1126 = vmatmul.mubr.msk.f32.vlgmr.msra.gmra.mrb[6].mxu1 %vm61_vm2, %v774_v23 }
0x1410   :  { %v846_v25 = vpop.f32.mrb[6].mxu1 }
0x1411   :  { %v847_v26 = vadd.f32 %v846_v25, %v777_v24  ;;  %v1127_v27 = vpop.f32.mrb[7].mxu1 }
0x1413   :  { %1259 = vtanh.f32 %v847_v26  ;;  %v991_v29 = vmul.f32 -1.442695, %v847_v26 }
0x1415   :  { %1261 = vpow2.f32 %v991_v29 }
0x141d   :  { %v1260_v28 = vpop.eup %1259 }
0x141e   :  { %859 = vrot.lane.b32.xlu0 %v1260_v28, %s1271_s10 }
0x141f   :  { %v1262_v30 = vpop.eup %1261 }
0x1420   :  { %v853_v31 = vadd.f32 1.0, %v1262_v30 }
0x1422   :  { %1263 = vrcp.f32 %v853_v31 }
0x142c   :  { %v1264_v32 = vpop.eup %1263 }
0x142d   :  { %v857_v35 = vmul.f32 %v1264_v32, %v765_v19 }
0x1490   :  { %v860_v33 = vpop.permute.xlu0 %859 }
0x1491   :  { %v862_v34 = vmul.f32 %v1264_v32, %v860_v33 }
0x1493   :  { %864 = vrot.lane.b32.xlu1 %v862_v34, %s1272_s1 }
0x1505   :  { %v865_v36 = vpop.permute.xlu1 %864 }
0x1506   :  { %v867_v37 = vadd.f32 %v865_v36, %v857_v35 }
0x1508   :  { %1265 = vtanh.f32 %v867_v37 }
0x1512   :  { %v1266_v10 = vpop.eup %1265 }
0x1513   :  { %870 = vrot.lane.b32.xlu0 %v1266_v10, %s1271_s10 }
0x1585   :  { %v871_v43 = vpop.permute.xlu0 %870 }
0x1586   :  { %v873_v44 = vmul.f32 %v1264_v32, %v871_v43 }
0x1588   :  { %875 = vrot.lane.b32.xlu1 %v873_v44, %s1272_s1 }
0x15fa   :  { %v876_v45 = vpop.permute.xlu1 %875 }
0x15fb   :  { %878 = vst.msk [vmem:[#allocation2 + $0xe] sm:$0x3] %vm163_vm1, %v876_v45 }
0x1602   :  { %v880_v46 = vld [vmem:[#allocation2 + $0x8] sm:$0xff] }
0x1603   :  { %1137 = vmatmul.mubr.msk.f32.vlgmr.msra.gmra.mrb[8].mxu0 %vm61_vm2, %v880_v46 }
0x16d6   :  { %v1138_v48 = vpop.f32.mrb[8].mxu0 }
0x16d7   :  { %v965_v49 = vadd.f32 %v1138_v48, %v886_v47  ;;  %v959_v50 = vpop.f32.mrb[9].mxu0 }
0x16d8   :  { %v960_v51 = vadd.f32 %v959_v50, %v886_v47 }
0x16d9   :  { %970 = vst.msk [vmem:[%s1469_s6 + $0x8] sm:$0xff] %vm968_vm3, %v965_v49 }
0x16da   :  { %969 = vst.msk [vmem:[%s1469_s6] sm:$0xff] %vm968_vm3, %v960_v51 }

</bundles_post_ra>
